<compile_context>
chip_gen: v5e
topology: v5e:2x2
jax: 0.10.0
libtpu: 0.0.40
codegen_flags: <defaults>
</compile_context>

<pallas_src>
import math
from functools import partial

import jax
import jax.numpy as jnp
from jax import lax
from jax.experimental import pallas as pl
from jax.experimental.pallas import tpu as pltpu


# ------------------------------- Pallas kernel -------------------------------

def _cross_self_attn_kernel(hid_ref, kv_ref,
                            wq_ref, bq_ref, wk_ref, bk_ref, wv_ref, bv_ref,
                            o_ref, *, num_heads, scale):
    """One batch element per grid step; fully VMEM-resident fused layer."""
    hid = hid_ref[...]                      # (Sq, H)   query-side tokens
    kv_in = kv_ref[...]                     # (Sk, E)   key/value-side tokens

    # Fused Q/K/V projections (MXU, f32 accumulation).
    q = jnp.dot(hid, wq_ref[...], preferred_element_type=jnp.float32) + bq_ref[...]
    k = jnp.dot(kv_in, wk_ref[...], preferred_element_type=jnp.float32) + bk_ref[...]
    v = jnp.dot(kv_in, wv_ref[...], preferred_element_type=jnp.float32) + bv_ref[...]

    h_dim = q.shape[-1]
    dh = h_dim // num_heads

    # Heads split in-kernel with static slices (small static unroll), so the
    # only store is the concatenated, lane-dense (Sq, H) context tile.
    outs = []
    for h in range(num_heads):
        sl = slice(h * dh, (h + 1) * dh)
        qh, kh, vh = q[:, sl], k[:, sl], v[:, sl]
        s = lax.dot_general(qh, kh, (((1,), (1,)), ((), ())),
                            preferred_element_type=jnp.float32) * scale
        m = jnp.max(s, axis=-1, keepdims=True)
        p = jnp.exp(s - m)
        l = jnp.sum(p, axis=-1, keepdims=True)
        # approx reciprocal -> EUP slot (free alongside VPU/MXU work).
        outs.append(jnp.dot(p * pl.reciprocal(l, approx=True), vh,
                            preferred_element_type=jnp.float32))
    o_ref[...] = jnp.concatenate(outs, axis=-1)     # (Sq, H), full lane width


# --------------------------------- wrapper -----------------------------------

def cross_self_attention(hidden_states, params, encoder_hidden_states=None,
                         *, num_heads):
    """Equivalent of CrossSelfAttentionLayer.forward (eval mode, dropout=0)."""
    kv_src = (encoder_hidden_states if encoder_hidden_states is not None
              else hidden_states)
    B, sq, h_dim = hidden_states.shape
    sk, e_dim = kv_src.shape[1], kv_src.shape[2]
    dh = h_dim // num_heads
    scale = 1.0 / math.sqrt(dh)

    wq, bq = params["wq"], params["bq"].reshape(1, h_dim)
    wk, bk = params["wk"], params["bk"].reshape(1, h_dim)
    wv, bv = params["wv"], params["bv"].reshape(1, h_dim)

    def full(shape):
        return pl.BlockSpec(shape, lambda b: (0,) * len(shape))

    return pl.pallas_call(
        partial(_cross_self_attn_kernel, num_heads=num_heads, scale=scale),
        out_shape=jax.ShapeDtypeStruct((B, sq, h_dim), jnp.float32),
        grid=(B,),
        in_specs=[
            pl.BlockSpec((None, sq, h_dim), lambda b: (b, 0, 0)),   # hidden
            pl.BlockSpec((None, sk, e_dim), lambda b: (b, 0, 0)),   # k/v source
            full((h_dim, h_dim)), full((1, h_dim)),                 # Wq, bq
            full((e_dim, h_dim)), full((1, h_dim)),                 # Wk, bk
            full((e_dim, h_dim)), full((1, h_dim)),                 # Wv, bv
        ],
        out_specs=pl.BlockSpec((None, sq, h_dim), lambda b: (b, 0, 0)),
        compiler_params=pltpu.CompilerParams(
            dimension_semantics=("parallel",)),     # megacore on v7x
    )(hidden_states, kv_src, wq, bq, wk, bk, wv, bv)


# --------------------------- pure-JAX reference -------------------------------

def reference_attention(hidden, params, enc=None, *, num_heads):
    kv = enc if enc is not None else hidden
    q = hidden @ params["wq"] + params["bq"]
    k = kv @ params["wk"] + params["bk"]
    v = kv @ params["wv"] + params["bv"]
    B, sq, h_dim = q.shape
    dh = h_dim // num_heads
    qh = q.reshape(B, sq, num_heads, dh).transpose(0, 2, 1, 3)
    kh = k.reshape(B, -1, num_heads, dh).transpose(0, 2, 1, 3)
    vh = v.reshape(B, -1, num_heads, dh).transpose(0, 2, 1, 3)
    s = jnp.einsum("bhqd,bhkd->bhqk", qh, kh,
                   precision=lax.Precision.HIGHEST) / math.sqrt(dh)
    p = jax.nn.softmax(s, axis=-1)
    o = jnp.einsum("bhqk,bhkd->bhqd", p, vh, precision=lax.Precision.HIGHEST)
    return o.transpose(0, 2, 1, 3).reshape(B, sq, h_dim)


# ------------------------------------ main ------------------------------------

if __name__ == "__main__":
    B, SQ, SK = 2, 8, 16
    HIDDEN, NUM_HEADS, ENC_HIDDEN = 64, 4, 48

    key = jax.random.PRNGKey(0)
    ks = jax.random.split(key, 10)

    def nrm(k, shape, scale=0.05):
        return scale * jax.random.normal(k, shape, dtype=jnp.float32)

    # Cross-attention parameters (key/value project from encoder_hidden_size).
    cross_params = {
        "wq": nrm(ks[0], (HIDDEN, HIDDEN)),     "bq": nrm(ks[1], (HIDDEN,)),
        "wk": nrm(ks[2], (ENC_HIDDEN, HIDDEN)), "bk": nrm(ks[3], (HIDDEN,)),
        "wv": nrm(ks[4], (ENC_HIDDEN, HIDDEN)), "bv": nrm(ks[5], (HIDDEN,)),
    }
    # Self-attention parameters (key/value project from hidden_size).
    self_params = {
        "wq": nrm(ks[0], (HIDDEN, HIDDEN)), "bq": nrm(ks[1], (HIDDEN,)),
        "wk": nrm(ks[6], (HIDDEN, HIDDEN)), "bk": nrm(ks[3], (HIDDEN,)),
        "wv": nrm(ks[7], (HIDDEN, HIDDEN)), "bv": nrm(ks[5], (HIDDEN,)),
    }

    hidden = jax.random.normal(ks[8], (B, SQ, HIDDEN), dtype=jnp.float32)
    enc = jax.random.normal(ks[9], (B, SK, ENC_HIDDEN), dtype=jnp.float32)

    # Cross-attention path (encoder_hidden_states provided).
    out_cross = cross_self_attention(hidden, cross_params, enc,
                                     num_heads=NUM_HEADS)
    # Self-attention path (encoder_hidden_states=None).
    out_self = cross_self_attention(hidden, self_params, None,
                                    num_heads=NUM_HEADS)
    jax.block_until_ready((out_cross, out_self))

    assert out_cross.shape == (B, SQ, HIDDEN)
    assert out_self.shape == (B, SQ, HIDDEN)

    ref_cross = reference_attention(hidden, cross_params, enc,
                                    num_heads=NUM_HEADS)
    ref_self = reference_attention(hidden, self_params, None,
                                   num_heads=NUM_HEADS)
    assert float(jnp.max(jnp.abs(out_cross - ref_cross))) < 5e-3
    assert float(jnp.max(jnp.abs(out_self - ref_self))) < 5e-3

    print("KERNEL_OK")
</pallas_src>

<mosaic_0001>
module attributes {stable_mosaic.version = 11 : i64} {
  func.func @_cross_self_attn_kernel(%arg0: i32, %arg1: memref<1x8x64xf32, #tpu.memory_space<vmem>>, %arg2: memref<1x16x48xf32, #tpu.memory_space<vmem>>, %arg3: memref<64x64xf32, #tpu.memory_space<vmem>>, %arg4: memref<1x64xf32, #tpu.memory_space<vmem>>, %arg5: memref<48x64xf32, #tpu.memory_space<vmem>>, %arg6: memref<1x64xf32, #tpu.memory_space<vmem>>, %arg7: memref<48x64xf32, #tpu.memory_space<vmem>>, %arg8: memref<1x64xf32, #tpu.memory_space<vmem>>, %arg9: memref<1x8x64xf32, #tpu.memory_space<vmem>>) attributes {dimension_semantics = [#tpu.dimension_semantics<parallel>], iteration_bounds = array<i64: 2>, scalar_prefetch = 0 : i64, scratch_operands = 0 : i64, tpu.core_type = #tpu.core_type<tc>, window_params = [{transform_indices = @transform_0, window_bounds = array<i64: 1, 8, 64>}, {transform_indices = @transform_1, window_bounds = array<i64: 1, 16, 48>}, {pipeline_mode = #tpu.pipeline_mode<synchronous>, transform_indices = @transform_2, window_bounds = array<i64: 64, 64>}, {pipeline_mode = #tpu.pipeline_mode<synchronous>, transform_indices = @transform_3, window_bounds = array<i64: 1, 64>}, {pipeline_mode = #tpu.pipeline_mode<synchronous>, transform_indices = @transform_4, window_bounds = array<i64: 48, 64>}, {pipeline_mode = #tpu.pipeline_mode<synchronous>, transform_indices = @transform_5, window_bounds = array<i64: 1, 64>}, {pipeline_mode = #tpu.pipeline_mode<synchronous>, transform_indices = @transform_6, window_bounds = array<i64: 48, 64>}, {pipeline_mode = #tpu.pipeline_mode<synchronous>, transform_indices = @transform_7, window_bounds = array<i64: 1, 64>}, {transform_indices = @transform_8, window_bounds = array<i64: 1, 8, 64>}]} {
    %c0 = arith.constant 0 : index
    %c0_0 = arith.constant 0 : index
    %c0_1 = arith.constant 0 : index
    %0 = vector.load %arg1[%c0, %c0_0, %c0_1] : memref<1x8x64xf32, #tpu.memory_space<vmem>>, vector<1x8x64xf32>
    %1 = vector.shape_cast %0 : vector<1x8x64xf32> to vector<8x64xf32>
    %c0_2 = arith.constant 0 : index
    %c0_3 = arith.constant 0 : index
    %c0_4 = arith.constant 0 : index
    %2 = vector.load %arg2[%c0_2, %c0_3, %c0_4] : memref<1x16x48xf32, #tpu.memory_space<vmem>>, vector<1x16x48xf32>
    %3 = vector.shape_cast %2 : vector<1x16x48xf32> to vector<16x48xf32>
    %c0_5 = arith.constant 0 : index
    %c0_6 = arith.constant 0 : index
    %4 = vector.load %arg3[%c0_5, %c0_6] : memref<64x64xf32, #tpu.memory_space<vmem>>, vector<64x64xf32>
    %cst = arith.constant dense<0.000000e+00> : vector<8x64xf32>
    %5 = tpu.matmul %1, %4, %cst {dimension_numbers = #tpu.dot_dimension_numbers<[1], [0], [0], [1], [0, 0, 1, 1], [], []>} : vector<8x64xf32>, vector<64x64xf32>, vector<8x64xf32> -> vector<8x64xf32>
    %c0_7 = arith.constant 0 : index
    %c0_8 = arith.constant 0 : index
    %6 = vector.load %arg4[%c0_7, %c0_8] : memref<1x64xf32, #tpu.memory_space<vmem>>, vector<1x64xf32>
    %7 = vector.broadcast %6 : vector<1x64xf32> to vector<8x64xf32>
    %8 = arith.addf %5, %7 : vector<8x64xf32>
    %c0_9 = arith.constant 0 : index
    %c0_10 = arith.constant 0 : index
    %9 = vector.load %arg5[%c0_9, %c0_10] : memref<48x64xf32, #tpu.memory_space<vmem>>, vector<48x64xf32>
    %cst_11 = arith.constant dense<0.000000e+00> : vector<16x64xf32>
    %10 = tpu.matmul %3, %9, %cst_11 {dimension_numbers = #tpu.dot_dimension_numbers<[1], [0], [0], [1], [0, 0, 1, 1], [], []>} : vector<16x48xf32>, vector<48x64xf32>, vector<16x64xf32> -> vector<16x64xf32>
    %c0_12 = arith.constant 0 : index
    %c0_13 = arith.constant 0 : index
    %11 = vector.load %arg6[%c0_12, %c0_13] : memref<1x64xf32, #tpu.memory_space<vmem>>, vector<1x64xf32>
    %12 = vector.broadcast %11 : vector<1x64xf32> to vector<16x64xf32>
    %13 = arith.addf %10, %12 : vector<16x64xf32>
    %c0_14 = arith.constant 0 : index
    %c0_15 = arith.constant 0 : index
    %14 = vector.load %arg7[%c0_14, %c0_15] : memref<48x64xf32, #tpu.memory_space<vmem>>, vector<48x64xf32>
    %cst_16 = arith.constant dense<0.000000e+00> : vector<16x64xf32>
    %15 = tpu.matmul %3, %14, %cst_16 {dimension_numbers = #tpu.dot_dimension_numbers<[1], [0], [0], [1], [0, 0, 1, 1], [], []>} : vector<16x48xf32>, vector<48x64xf32>, vector<16x64xf32> -> vector<16x64xf32>
    %c0_17 = arith.constant 0 : index
    %c0_18 = arith.constant 0 : index
    %16 = vector.load %arg8[%c0_17, %c0_18] : memref<1x64xf32, #tpu.memory_space<vmem>>, vector<1x64xf32>
    %17 = vector.broadcast %16 : vector<1x64xf32> to vector<16x64xf32>
    %18 = arith.addf %15, %17 : vector<16x64xf32>
    %19 = vector.extract_strided_slice %8 {offsets = [0, 0], sizes = [8, 16], strides = [1, 1]} : vector<8x64xf32> to vector<8x16xf32>
    %20 = vector.extract_strided_slice %13 {offsets = [0, 0], sizes = [16, 16], strides = [1, 1]} : vector<16x64xf32> to vector<16x16xf32>
    %21 = vector.extract_strided_slice %18 {offsets = [0, 0], sizes = [16, 16], strides = [1, 1]} : vector<16x64xf32> to vector<16x16xf32>
    %cst_19 = arith.constant dense<0.000000e+00> : vector<8x16xf32>
    %22 = tpu.matmul %19, %20, %cst_19 {dimension_numbers = #tpu.dot_dimension_numbers<[1], [1], [0], [0], [0, 0, 1, 0], [], []>} : vector<8x16xf32>, vector<16x16xf32>, vector<8x16xf32> -> vector<8x16xf32>
    %cst_20 = arith.constant 2.500000e-01 : f32
    %23 = vector.broadcast %cst_20 : f32 to vector<8x16xf32>
    %24 = arith.mulf %22, %23 : vector<8x16xf32>
    %cst_21 = arith.constant dense<0xFF800000> : vector<8xf32>
    %25 = vector.multi_reduction <maximumf>, %24, %cst_21 [1] : vector<8x16xf32> to vector<8xf32>
    %26 = vector.shape_cast %25 : vector<8xf32> to vector<8x1xf32>
    %27 = vector.broadcast %26 : vector<8x1xf32> to vector<8x16xf32>
    %28 = arith.subf %24, %27 : vector<8x16xf32>
    %29 = math.exp %28 : vector<8x16xf32>
    %cst_22 = arith.constant dense<0.000000e+00> : vector<8xf32>
    %30 = vector.multi_reduction <add>, %29, %cst_22 [1] : vector<8x16xf32> to vector<8xf32>
    %31 = vector.shape_cast %30 : vector<8xf32> to vector<8x1xf32>
    %32 = tpu.reciprocal %31 {approx = true} : vector<8x1xf32> -> vector<8x1xf32>
    %33 = vector.broadcast %32 : vector<8x1xf32> to vector<8x16xf32>
    %34 = arith.mulf %29, %33 : vector<8x16xf32>
    %cst_23 = arith.constant dense<0.000000e+00> : vector<8x16xf32>
    %35 = tpu.matmul %34, %21, %cst_23 {dimension_numbers = #tpu.dot_dimension_numbers<[1], [0], [0], [1], [0, 0, 1, 1], [], []>} : vector<8x16xf32>, vector<16x16xf32>, vector<8x16xf32> -> vector<8x16xf32>
    %36 = vector.extract_strided_slice %8 {offsets = [0, 16], sizes = [8, 16], strides = [1, 1]} : vector<8x64xf32> to vector<8x16xf32>
    %37 = vector.extract_strided_slice %13 {offsets = [0, 16], sizes = [16, 16], strides = [1, 1]} : vector<16x64xf32> to vector<16x16xf32>
    %38 = vector.extract_strided_slice %18 {offsets = [0, 16], sizes = [16, 16], strides = [1, 1]} : vector<16x64xf32> to vector<16x16xf32>
    %cst_24 = arith.constant dense<0.000000e+00> : vector<8x16xf32>
    %39 = tpu.matmul %36, %37, %cst_24 {dimension_numbers = #tpu.dot_dimension_numbers<[1], [1], [0], [0], [0, 0, 1, 0], [], []>} : vector<8x16xf32>, vector<16x16xf32>, vector<8x16xf32> -> vector<8x16xf32>
    %cst_25 = arith.constant 2.500000e-01 : f32
    %40 = vector.broadcast %cst_25 : f32 to vector<8x16xf32>
    %41 = arith.mulf %39, %40 : vector<8x16xf32>
    %cst_26 = arith.constant dense<0xFF800000> : vector<8xf32>
    %42 = vector.multi_reduction <maximumf>, %41, %cst_26 [1] : vector<8x16xf32> to vector<8xf32>
    %43 = vector.shape_cast %42 : vector<8xf32> to vector<8x1xf32>
    %44 = vector.broadcast %43 : vector<8x1xf32> to vector<8x16xf32>
    %45 = arith.subf %41, %44 : vector<8x16xf32>
    %46 = math.exp %45 : vector<8x16xf32>
    %cst_27 = arith.constant dense<0.000000e+00> : vector<8xf32>
    %47 = vector.multi_reduction <add>, %46, %cst_27 [1] : vector<8x16xf32> to vector<8xf32>
    %48 = vector.shape_cast %47 : vector<8xf32> to vector<8x1xf32>
    %49 = tpu.reciprocal %48 {approx = true} : vector<8x1xf32> -> vector<8x1xf32>
    %50 = vector.broadcast %49 : vector<8x1xf32> to vector<8x16xf32>
    %51 = arith.mulf %46, %50 : vector<8x16xf32>
    %cst_28 = arith.constant dense<0.000000e+00> : vector<8x16xf32>
    %52 = tpu.matmul %51, %38, %cst_28 {dimension_numbers = #tpu.dot_dimension_numbers<[1], [0], [0], [1], [0, 0, 1, 1], [], []>} : vector<8x16xf32>, vector<16x16xf32>, vector<8x16xf32> -> vector<8x16xf32>
    %53 = vector.extract_strided_slice %8 {offsets = [0, 32], sizes = [8, 16], strides = [1, 1]} : vector<8x64xf32> to vector<8x16xf32>
    %54 = vector.extract_strided_slice %13 {offsets = [0, 32], sizes = [16, 16], strides = [1, 1]} : vector<16x64xf32> to vector<16x16xf32>
    %55 = vector.extract_strided_slice %18 {offsets = [0, 32], sizes = [16, 16], strides = [1, 1]} : vector<16x64xf32> to vector<16x16xf32>
    %cst_29 = arith.constant dense<0.000000e+00> : vector<8x16xf32>
    %56 = tpu.matmul %53, %54, %cst_29 {dimension_numbers = #tpu.dot_dimension_numbers<[1], [1], [0], [0], [0, 0, 1, 0], [], []>} : vector<8x16xf32>, vector<16x16xf32>, vector<8x16xf32> -> vector<8x16xf32>
    %cst_30 = arith.constant 2.500000e-01 : f32
    %57 = vector.broadcast %cst_30 : f32 to vector<8x16xf32>
    %58 = arith.mulf %56, %57 : vector<8x16xf32>
    %cst_31 = arith.constant dense<0xFF800000> : vector<8xf32>
    %59 = vector.multi_reduction <maximumf>, %58, %cst_31 [1] : vector<8x16xf32> to vector<8xf32>
    %60 = vector.shape_cast %59 : vector<8xf32> to vector<8x1xf32>
    %61 = vector.broadcast %60 : vector<8x1xf32> to vector<8x16xf32>
    %62 = arith.subf %58, %61 : vector<8x16xf32>
    %63 = math.exp %62 : vector<8x16xf32>
    %cst_32 = arith.constant dense<0.000000e+00> : vector<8xf32>
    %64 = vector.multi_reduction <add>, %63, %cst_32 [1] : vector<8x16xf32> to vector<8xf32>
    %65 = vector.shape_cast %64 : vector<8xf32> to vector<8x1xf32>
    %66 = tpu.reciprocal %65 {approx = true} : vector<8x1xf32> -> vector<8x1xf32>
    %67 = vector.broadcast %66 : vector<8x1xf32> to vector<8x16xf32>
    %68 = arith.mulf %63, %67 : vector<8x16xf32>
    %cst_33 = arith.constant dense<0.000000e+00> : vector<8x16xf32>
    %69 = tpu.matmul %68, %55, %cst_33 {dimension_numbers = #tpu.dot_dimension_numbers<[1], [0], [0], [1], [0, 0, 1, 1], [], []>} : vector<8x16xf32>, vector<16x16xf32>, vector<8x16xf32> -> vector<8x16xf32>
    %70 = vector.extract_strided_slice %8 {offsets = [0, 48], sizes = [8, 16], strides = [1, 1]} : vector<8x64xf32> to vector<8x16xf32>
    %71 = vector.extract_strided_slice %13 {offsets = [0, 48], sizes = [16, 16], strides = [1, 1]} : vector<16x64xf32> to vector<16x16xf32>
    %72 = vector.extract_strided_slice %18 {offsets = [0, 48], sizes = [16, 16], strides = [1, 1]} : vector<16x64xf32> to vector<16x16xf32>
    %cst_34 = arith.constant dense<0.000000e+00> : vector<8x16xf32>
    %73 = tpu.matmul %70, %71, %cst_34 {dimension_numbers = #tpu.dot_dimension_numbers<[1], [1], [0], [0], [0, 0, 1, 0], [], []>} : vector<8x16xf32>, vector<16x16xf32>, vector<8x16xf32> -> vector<8x16xf32>
    %cst_35 = arith.constant 2.500000e-01 : f32
    %74 = vector.broadcast %cst_35 : f32 to vector<8x16xf32>
    %75 = arith.mulf %73, %74 : vector<8x16xf32>
    %cst_36 = arith.constant dense<0xFF800000> : vector<8xf32>
    %76 = vector.multi_reduction <maximumf>, %75, %cst_36 [1] : vector<8x16xf32> to vector<8xf32>
    %77 = vector.shape_cast %76 : vector<8xf32> to vector<8x1xf32>
    %78 = vector.broadcast %77 : vector<8x1xf32> to vector<8x16xf32>
    %79 = arith.subf %75, %78 : vector<8x16xf32>
    %80 = math.exp %79 : vector<8x16xf32>
    %cst_37 = arith.constant dense<0.000000e+00> : vector<8xf32>
    %81 = vector.multi_reduction <add>, %80, %cst_37 [1] : vector<8x16xf32> to vector<8xf32>
    %82 = vector.shape_cast %81 : vector<8xf32> to vector<8x1xf32>
    %83 = tpu.reciprocal %82 {approx = true} : vector<8x1xf32> -> vector<8x1xf32>
    %84 = vector.broadcast %83 : vector<8x1xf32> to vector<8x16xf32>
    %85 = arith.mulf %80, %84 : vector<8x16xf32>
    %cst_38 = arith.constant dense<0.000000e+00> : vector<8x16xf32>
    %86 = tpu.matmul %85, %72, %cst_38 {dimension_numbers = #tpu.dot_dimension_numbers<[1], [0], [0], [1], [0, 0, 1, 1], [], []>} : vector<8x16xf32>, vector<16x16xf32>, vector<8x16xf32> -> vector<8x16xf32>
    %87 = tpu.concatenate %35, %52, %69, %86 in 1 : vector<8x16xf32>, vector<8x16xf32>, vector<8x16xf32>, vector<8x16xf32> -> vector<8x64xf32>
    %c0_39 = arith.constant 0 : index
    %c0_40 = arith.constant 0 : index
    %c0_41 = arith.constant 0 : index
    %88 = vector.load %arg9[%c0_39, %c0_40, %c0_41] : memref<1x8x64xf32, #tpu.memory_space<vmem>>, vector<1x8x64xf32>
    %89 = vector.shape_cast %88 : vector<1x8x64xf32> to vector<8x64xf32>
    %90 = vector.shape_cast %87 : vector<8x64xf32> to vector<1x8x64xf32>
    tpu.vector_store %arg9[%c0_39, %c0_40, %c0_41], %90 {strides = array<i32>} : memref<1x8x64xf32, #tpu.memory_space<vmem>>, vector<1x8x64xf32>,
    return
  }
  func.func @transform_0(%arg0: i32) -> (i32, i32, i32) {
    %c0_i32 = arith.constant 0 : i32
    %c0_i32_0 = arith.constant 0 : i32
    %c0_i32_1 = arith.constant 0 : i32
    return %arg0, %c0_i32, %c0_i32_0 : i32, i32, i32
  }
  func.func @transform_1(%arg0: i32) -> (i32, i32, i32) {
    %c0_i32 = arith.constant 0 : i32
    %c0_i32_0 = arith.constant 0 : i32
    %c0_i32_1 = arith.constant 0 : i32
    return %arg0, %c0_i32, %c0_i32_0 : i32, i32, i32
  }
  func.func @transform_2(%arg0: i32) -> (i32, i32) {
    %c0_i32 = arith.constant 0 : i32
    %c0_i32_0 = arith.constant 0 : i32
    %c0_i32_1 = arith.constant 0 : i32
    return %c0_i32, %c0_i32_0 : i32, i32
  }
  func.func @transform_3(%arg0: i32) -> (i32, i32) {
    %c0_i32 = arith.constant 0 : i32
    %c0_i32_0 = arith.constant 0 : i32
    %c0_i32_1 = arith.constant 0 : i32
    return %c0_i32, %c0_i32_0 : i32, i32
  }
  func.func @transform_4(%arg0: i32) -> (i32, i32) {
    %c0_i32 = arith.constant 0 : i32
    %c0_i32_0 = arith.constant 0 : i32
    %c0_i32_1 = arith.constant 0 : i32
    return %c0_i32, %c0_i32_0 : i32, i32
  }
  func.func @transform_5(%arg0: i32) -> (i32, i32) {
    %c0_i32 = arith.constant 0 : i32
    %c0_i32_0 = arith.constant 0 : i32
    %c0_i32_1 = arith.constant 0 : i32
    return %c0_i32, %c0_i32_0 : i32, i32
  }
  func.func @transform_6(%arg0: i32) -> (i32, i32) {
    %c0_i32 = arith.constant 0 : i32
    %c0_i32_0 = arith.constant 0 : i32
    %c0_i32_1 = arith.constant 0 : i32
    return %c0_i32, %c0_i32_0 : i32, i32
  }
  func.func @transform_7(%arg0: i32) -> (i32, i32) {
    %c0_i32 = arith.constant 0 : i32
    %c0_i32_0 = arith.constant 0 : i32
    %c0_i32_1 = arith.constant 0 : i32
    return %c0_i32, %c0_i32_0 : i32, i32
  }
  func.func @transform_8(%arg0: i32) -> (i32, i32, i32) {
    %c0_i32 = arith.constant 0 : i32
    %c0_i32_0 = arith.constant 0 : i32
    %c0_i32_1 = arith.constant 0 : i32
    return %arg0, %c0_i32, %c0_i32_0 : i32, i32, i32
  }
}

</mosaic_0001>

<bundles_post_ra>
// kernel: tpu_custom_call.1
= control target key start
LH: loop header
LB: loop body
LE: loop exit
PB: predicated region body
PF: predicated region fallthrough
CT: control target
= control target key end

     0   :  { %s1688_s0 = inlined_call_operand.hbm [shape: f32[2,8,64], index: 0, kind: input, shape index: {}]   ;;  %s1689_s1 = inlined_call_operand.hbm [shape: f32[2,16,48], index: 1, kind: input, shape index: {}]   ;;  %s1690_s2 = inlined_call_operand.hbm [shape: f32[64,64], index: 2, kind: input, shape index: {}]   ;;  %s1691_s3 = inlined_call_operand.vmem [shape: f32[1,64], index: 3, kind: input, shape index: {}]   ;;  %s1692_s4 = inlined_call_operand.hbm [shape: f32[48,64], index: 4, kind: input, shape index: {}]   ;;  %s1693_s5 = inlined_call_operand.vmem [shape: f32[1,64], index: 5, kind: input, shape index: {}]   ;;  %s1694_s6 = inlined_call_operand.hbm [shape: f32[48,64], index: 6, kind: input, shape index: {}]   ;;  %s1695_s7 = inlined_call_operand.vmem [shape: f32[1,64], index: 7, kind: input, shape index: {}]   ;;  %s1696_s8 = inlined_call_operand.hbm [shape: f32[2,8,64], index: 8, kind: output, shape index: {}]  }
   0x1   :  { %1702 = sst [smem:[#allocation20_spill]] %s1690_s2 }
   0x2   :  { %1703 = sst [smem:[#allocation21_spill]] %s1692_s4 }
   0x3   :  { %1704 = sst [smem:[#allocation22_spill]] %s1694_s6 }
   0x4   :  { %13 = vsyncpa [#allocation3], 0 }
   0x5   :  { %15 = vsyncpa [#allocation3 + $0x1], 0 }
   0x6   :  { %16 = vsyncpa [#allocation6], 0 }
   0x7   :  { %18 = vsyncpa [#allocation6 + $0x1], 0 }
   0x8   :  { %19 = vsyncpa [#allocation9], 0 }
   0x9   :  { %20 = vsyncpa [#allocation4], 0 }
   0xa   :  { %22 = vsyncpa [#allocation4 + $0x1], 0  ;;  %s1420_s27 = smov 0   ;;  %s1422_s28 = smov 0  }
   0xb   :  { %s1424_s29 = smov 0   ;;  %s1426_s30 = smov 0  }
   0xc LB: > { %1705 = sst [smem:[#allocation17_spill]] %s1358_s29  ;;  %s1444_s12 = sadd.s32 4294967295, %s1362_s30   ;;  %s1362_s30 = sphi %s1426_s30, %s1721_s30   ;;  %s1358_s29 = sphi %s1424_s29, %s1723_s29   ;;  %s1354_s28 = sphi %s1422_s28, %s1725_s28   ;;  %s1350_s27 = sphi %s1420_s27, %s1724_s27  }
   0xd   : > { %s1706_s2 = sld [smem:[#allocation20_spill]]  ;;  %p967_p0 = scmp.ge.s32.totalorder %s1362_s30, 1 }
   0xe   : > { %p49_p1 = scmp.eq.s32.totalorder %s1444_s12, 0  ;;  %p237_p2 = scmp.lt.s32.totalorder %s1362_s30, 3 }
   0xf   : > { %s1364_s14 = smov [#allocation7]   ;;  %s1708_s4 = sld [smem:[#allocation21_spill]] }
  0x10   : > { %p1449_p3 = pnand %p967_p0, %p237_p2  ;;  %s250_s15 = sshll.u32 %s1364_s14, 4  ;;  %s251_s15 = int_to_ptr.vmem [resolvable:$true] %s250_s15 }
  0x11   : > { %s1710_s6 = sld [smem:[#allocation22_spill]]  ;;  %s1365_s23 = smov [#allocation8]  }
  0x12   : > { %p1028_p4 = pneg %p1449_p3  ;;  %s267_s24 = sshll.u32 %s1365_s23, 4  ;;  %s268_s24 = int_to_ptr.vmem [resolvable:$true] %s267_s24 }
  0x13   : > { %s248_s11 = sshll.u32 %s1706_s2, 4  ;;  %s1697_s25 = smov 128   ;;  %s249_s11 = int_to_ptr.hbm [resolvable:$true] %s248_s11 }
  0x14   : > { %p1461_p6 = pnand %p1028_p4, %p49_p1  ;;  %s1698_s26 = smov 8  }
  0x15   : > { %s265_s18 = sshll.u32 %s1708_s4, 4  ;;  %s1368_s9 = smov [#allocation10]   ;;  %s266_s18 = int_to_ptr.hbm [resolvable:$true] %s265_s18 }
  0x16   : > { %1031 = dma.hbm_to_vmem [thread:$0]  (!%p1461_p6), %s249_s11, 1024, %s251_s15, [#allocation6], %s1697_s25, %s1697_s25, %s1698_s26  }
  0x17   : > { %s282_s22 = sshll.u32 %s1710_s6, 4  ;;  %s284_s10 = sshll.u32 %s1368_s9, 4  ;;  %s283_s22 = int_to_ptr.hbm [resolvable:$true] %s282_s22  ;;  %s285_s10 = int_to_ptr.vmem [resolvable:$true] %s284_s10 }
  0x18   : > { %1034 = dma.hbm_to_vmem [thread:$0]  (!%p1461_p6), %s266_s18, 768, %s268_s24, [#allocation9], %s1697_s25, %s1697_s25, %s1698_s26  }
  0x19   : > { %1037 = dma.hbm_to_vmem [thread:$0]  (!%p1461_p6), %s283_s22, 768, %s285_s10, [#allocation9], %s1697_s25, %s1697_s25, %s1698_s26  }
  0x1a   : > { %s966_s11 = sadd.s32 4294967294, %s1362_s30   ;;  %s1485_s14 = sadd.s32 1, %s1362_s30  }
  0x1b   : > { %1711 = sst [smem:[#allocation18_spill]] %s1485_s14  ;;  %s35_s15 = sadd.s32 1, %s1358_s29 }
  0x1c   : > { %s32_s16 = ssub.s32 %s1362_s30, %s1485_s14  ;;  %p42_p7 = scmp.ne.s32.totalorder %s1358_s29, %s1354_s28 }
  0x1d   : > { %p33_p8 = scmp.eq.s32.totalorder %s32_s16, 0  ;;  %p43_p9 = scmp.eq.s32.totalorder %s1362_s30, 0 }
  0x1e   : > { %p48_p10 = scmp.ne.s32.totalorder %s1354_s28, %s1350_s27  ;;  %p224_p11 = scmp.eq.s32.totalorder %s1444_s12, 1 }
  0x1f   : > { %s1497_s17 = scalar_select %p33_p8, %s1358_s29, %s35_s15  }
  0x20   : > { %p1499_p12 = por %p43_p9, %p42_p7  ;;  %p1505_p13 = por %p49_p1, %p48_p10 }
  0x21   : > { %1712 = sst [smem:[#allocation19_spill]] %s1497_s17  ;;  %p1509_p0 = por %p224_p11, %p42_p7 }
  0x22   : > { %p230_p2 = scmp.eq.s32.totalorder %s966_s11, 1  ;;  %p1052_p4 = scmp.lt.s32.totalorder %s1362_s30, 2 }
  0x23   : > { %s1515_s21 = sand.u32 1, %s1358_s29   ;;  %s973_s24 = sshll.u32 %s1362_s30, 3 }
  0x24   : > { %p1517_p6 = por %p230_p2, %p48_p10  ;;  %s972_s23 = sshll.u32 %s1515_s21, 3 }
  0x25   : > { %s309_s15 = scalar_lea.hbm %s1688_s0, %s973_s24  ;;  %s305_s25 = scalar_lea.vmem [#allocation2], %s972_s23 }
  0x26   : > { %s311_s16 = sshll.u32 %s309_s15, 4  ;;  %s313_s26 = sshll.u32 %s305_s25, 4  ;;  %s312_s16 = int_to_ptr.hbm [resolvable:$true] %s311_s16  ;;  %s314_s26 = int_to_ptr.vmem [resolvable:$true] %s313_s26 }
  0x27   : > { %p1528_p7 = pnand %p1052_p4, %p1499_p12  ;;  %s974_s2 = sshll.u32 %s1515_s21, 4 }
  0x28   : > { %s320_s4 = sand.u32 1, %s1362_s30   ;;  %s324_s6 = scalar_lea.vmem [#allocation5], %s974_s2 }
  0x29   : > { %s332_s17 = sshll.u32 %s324_s6, 4  ;;  %s302_s29 = scalar_lea.sflag [#allocation3], %s1515_s21  ;;  %s333_s17 = int_to_ptr.vmem [resolvable:$true] %s332_s17 }
  0x2a   : > { %s1224_s14 = sshra.s32 %s312_s16, 4  ;;  %p1228_p9 = pneg %p1528_p7  ;;  %s1225_s14 = int_to_ptr.hbm [resolvable:$true] %s1224_s14 }
  0x2b   : > { %s1226_s24 = scalar_lea.hbm %s1225_s14, 8  ;;  %s1231_s23 = scalar_lea.hbm %s1688_s0, 16 }
  0x2c   : > { %p1227_p8 = scmp.ne.s32.totalorder %s1225_s14, %s1226_s24  ;;  %p1232_p12 = scmp.lt.s32.totalorder %s1225_s14, %s1688_s0 }
  0x2d   : > { %p1233_p2 = scmp.lt.s32.totalorder %s1231_s23, %s1226_s24 }
  0x2e   : > { %p1229_p10 = pnand %p1228_p9, %p1227_p8 }
  0x2f   : > { %p1234_p4 = por %p1233_p2, %p1232_p12 }
  0x30   : > { %p1230_p11 = pneg %p1229_p10 }
  0x32   : > { %p1235_p5 = pnand %p1234_p4, %p1230_p11 }
  0x34   : > { %1238 = shalt.err (!%p1235_p5)
}
  0x35   : > { %1041 = dma.hbm_to_vmem [thread:$0]  (!%p1528_p7), %s312_s16, 128, %s314_s26, %s302_s29  }
  0x36   : > { %s1009_s2 = sshll.u32 %s1362_s30, 4  ;;  %s321_s18 = scalar_lea.sflag [#allocation6], %s320_s4 }
  0x37   : > { %s329_s15 = scalar_lea.hbm %s1689_s1, %s1009_s2  ;;  %s1261_s29 = scalar_lea.hbm %s1689_s1, 32 }
  0x38   : > { %s330_s25 = sshll.u32 %s329_s15, 4  ;;  %s331_s25 = int_to_ptr.hbm [resolvable:$true] %s330_s25 }
  0x39   : > { %s1254_s9 = sshra.s32 %s331_s25, 4  ;;  %s1255_s9 = int_to_ptr.hbm [resolvable:$true] %s1254_s9 }
  0x3a   : > { %s1256_s14 = scalar_lea.hbm %s1255_s9, 16  ;;  %p1262_p11 = scmp.lt.s32.totalorder %s1255_s9, %s1689_s1 }
  0x3b   : > { %p1257_p8 = scmp.ne.s32.totalorder %s1255_s9, %s1256_s14  ;;  %p1263_p12 = scmp.lt.s32.totalorder %s1261_s29, %s1256_s14 }
  0x3d   : > { %p1259_p5 = pnand %p1257_p8, %p1228_p9  ;;  %p1264_p2 = por %p1263_p12, %p1262_p11 }
  0x3f   : > { %p1260_p10 = pneg %p1259_p5 }
  0x41   : > { %p1265_p4 = pnand %p1264_p2, %p1260_p10 }
  0x43   : > { %1268 = shalt.err (!%p1265_p4)
}
  0x44   : > { %s1718_s4 = smov 8   ;;  %s1719_s10 = smov 128  }
  0x45   : > { %1044 = dma.hbm_to_vmem [thread:$0]  (!%p1528_p7), %s331_s25, 256, %s333_s17, %s321_s18, %s1719_s10, %s1719_s10, %s1718_s4  }
  0x46   : > { %344 = sbr.rel (%p1449_p3) target bundleno = 1007 (0x3ef), region = 52  ;;  %s1569_s2 = sand.u32 (!%p1449_p3), 1, %s1354_s28  }
  0x47   : > { %s978_s6 = sshll.u32 (!%p1449_p3), %s1569_s2, 3  ;;  %s347_s21 = scalar_lea.sflag (!%p1449_p3), [#allocation3], %s1569_s2 }
  0x48   : > { %s1575_s15 = scalar_lea.vmem (!%p1449_p3), [#allocation2], %s978_s6 }
  0x4b   : > { %1329 = dma.done.wait (%p1505_p13), %s347_s21, 128  }
  0x4c   : > { %1331 = vsyncadd (%p1505_p13), %s347_s21, 4294967168  ;;  %s356_s13 = sand.u32 1, %s1444_s12   ;;  %s979_s17 = sshll.u32 %s1569_s2, 4 }
  0x4d   : > { %s357_s11 = scalar_lea.sflag [#allocation6], %s356_s13  ;;  %s1583_s25 = scalar_lea.vmem [#allocation5], %s979_s17 }
  0x4e   : > { %1333 = dma.done.wait (%p1505_p13), %s357_s11, 256  }
  0x4f   : > { %1335 = vsyncadd (%p1505_p13), %s357_s11, 4294967040 }
  0x50   : > { %1337 = dma.done.wait (%p49_p1), [#allocation6], 1024  }
  0x51   : > { %1339 = vsyncadd (%p49_p1), [#allocation6], 4294966272 }
  0x52   : > { %1341 = dma.done.wait (%p49_p1), [#allocation9], 1536  }
  0x53   : > { %1343 = vsyncadd (%p49_p1), [#allocation9], 4294965760  ;;  %v424_v0 = vld [vmem:[#allocation7 + $0x38] sm:$0xff]  ;;  %v458_v1 = vld [vmem:[#allocation8 + $0x28] sm:$0xff]  ;;  %vm463_vm0 = vcmask 392192   ;;  %vm429_vm1 = vcmask 523264  }
  0x54   : > { %v423_v2 = vld [vmem:[#allocation7 + $0x30] sm:$0xff]  ;;  %441 = vmatpush.msra.mxu0 %v424_v0  ;;  %480 = vmatpush.msra.mxu1 %v458_v1  ;;  %v457_v3 = vld [vmem:[#allocation8 + $0x20] sm:$0xff]  ;;  %v422_v4 = vld [vmem:[#allocation7 + $0x28] sm:$0xff]  ;;  %s1369_s24 = smov 96   ;;  %s1370_s23 = smov 112   ;;  %vm526_vm2 = vcmask 130048  }
  0x55   : > { %v456_v5 = vld [vmem:[#allocation8 + $0x18] sm:$0xff]  ;;  %v421_v6 = vld [vmem:[#allocation7 + $0x20] sm:$0xff]  ;;  %v455_v7 = vld [vmem:[#allocation8 + $0x10] sm:$0xff]  ;;  %s1371_s29 = smov 80   ;;  %s1372_s4 = smov 16   ;;  %vm825_vm3 = vcmask 261120  }
  0x56   : > { %442 = vmatpush.msra.mxu0 %v423_v2  ;;  %481 = vmatpush.msra.mxu1 %v457_v3  ;;  %v420_v8 = vld [vmem:[#allocation7 + $0x18] sm:$0xff]  ;;  %v454_v9 = vld [vmem:[#allocation8 + $0x8] sm:$0xff]  ;;  %v419_v10 = vld [vmem:[#allocation7 + $0x10] sm:$0xff]  ;;  %s1373_s10 = smov 32   ;;  %s1374_s21 = smov 48  }
  0x57   : > { %v453_v11 = vld [vmem:[#allocation8] sm:$0xff]  ;;  %v418_v13 = vld [vmem:[#allocation7 + $0x8] sm:$0xff]  ;;  %v414_v15 = vld [vmem:[%s1575_s15] sm:$0xff]  ;;  %s1006_s15 = sshll.u32 %s1444_s12, 3  ;;  %s830_s12 = scalar_lea.sflag [#allocation4], %s1569_s2 }
  0x58   : > { %443 = vmatpush.msra.mxu0 %v422_v4  ;;  %482 = vmatpush.msra.mxu1 %v456_v5  ;;  %v415_v12 = vld [vmem:[%s1583_s25] sm:$0xff]  ;;  %v416_v16 = vld [vmem:[%s1583_s25 + $0x8] sm:$0xff]  ;;  %s840_s11 = scalar_lea.hbm %s1696_s8, %s1006_s15  ;;  %s413_s25 = scalar_lea.vmem [#allocation11], %s978_s6 }
  0x59   : > { %v417_v14 = vld [vmem:[#allocation7] sm:$0xff]  ;;  %v1115_v17 = vld [vmem:[%s1693_s5] ss:$0 sm:$0xff]  ;;  %v498_v26 = vld [vmem:[#allocation10 + $0x28] sm:$0xff]  ;;  %s842_s19 = sshll.u32 %s413_s25, 4  ;;  %s844_s18 = sshll.u32 %s840_s11, 4  ;;  %s843_s19 = int_to_ptr.vmem [resolvable:$true] %s842_s19  ;;  %s845_s18 = int_to_ptr.hbm [resolvable:$true] %s844_s18 }
  0x5a   : > { %444 = vmatpush.msra.mxu0 %v421_v6  ;;  %483 = vmatpush.msra.mxu1 %v455_v7  ;;  %v1116_v20 = vld [vmem:[%s1691_s3] ss:$0 sm:$0xff]  ;;  %v496_v28 = vld [vmem:[#allocation10 + $0x18] sm:$0xff]  ;;  %v495_v31 = vld [vmem:[#allocation10 + $0x10] sm:$0xff]  ;;  %s1298_s9 = sshra.s32 %s845_s18, 4  ;;  %s1299_s9 = int_to_ptr.hbm [resolvable:$true] %s1298_s9 }
  0x5b   : > { %v497_v27 = vld [vmem:[#allocation10 + $0x20] sm:$0xff]  ;;  %513 = vmatpush.msra.mxu2 %v498_v26  ;;  %v494_v32 = vld [vmem:[#allocation10 + $0x8] sm:$0xff]  ;;  %s1300_s14 = scalar_lea.hbm %s1299_s9, 8  ;;  %p1305_p7 = scmp.lt.s32.totalorder %s1299_s9, %s1696_s8 }
  0x5c   : > { %445 = vmatpush.msra.mxu0 %v420_v8  ;;  %484 = vmatpush.msra.mxu1 %v454_v9  ;;  %v493_v34 = vld [vmem:[#allocation10] sm:$0xff]  ;;  %p1301_p1 = scmp.ne.s32.totalorder %s1299_s9, %s1300_s14 }
  0x5d   : > { %514 = vmatpush.msra.mxu2 %v497_v27  ;;  %v1117_v58 = vld [vmem:[%s1695_s7] ss:$0 sm:$0xff] }
  0x5e   : > { %446 = vmatpush.msra.mxu0 %v419_v10  ;;  %485 = vmatpush.msra.mxu1 %v453_v11  ;;  %p1302_p3 = pnand %p1301_p1, %p1509_p0 }
  0x5f   : > { %985 = vmatmul.msk.f32.vlgmr.msra.gmra.mxu1 %vm463_vm0, %v415_v12  ;;  %515 = vmatpush.msra.mxu2 %v496_v28 }
  0x60   : > { %447 = vmatpush.msra.mxu0 %v418_v13  ;;  %p1303_p13 = pneg %p1302_p3 }
  0x61   : > { %516 = vmatpush.msra.mxu2 %v495_v31 }
  0x62   : > { %448 = vmatpush.msra.mxu0 %v417_v14 }
  0x63   : > { %984 = vmatmul.msk.f32.vlgmr.msra.gmra.mxu0 %vm429_vm1, %v414_v15  ;;  %517 = vmatpush.msra.mxu2 %v494_v32 }
  0x65   : > { %518 = vmatpush.msra.mxu2 %v493_v34 }
  0x66   : > { %987 = vmatmul.msk.f32.vlgmr.msra.gmra.mxu2 %vm463_vm0, %v415_v12 }
  0x67   : > { %986 = vmatmul.msk.f32.gmra.mxu1 %vm463_vm0, %v416_v16 }
  0x6e   : > { %988 = vmatmul.msk.f32.gmra.mxu2 %vm463_vm0, %v416_v16 }
  0xdc   : > { %v487_v18 = vpop.f32.mrf.mxu1 }
  0xdd   : > { %v488_v19 = vadd.f32 %v1115_v17, %v487_v18 }
  0xdf   : > { %668 = vrot.lane.b32.xlu2 %v488_v19, %s1369_s24 }
  0xe0   : > { %v450_v21 = vpop.f32.mrf.mxu0 }
  0xe1   : > { %v451_v22 = vadd.f32 %v1116_v20, %v450_v21 }
  0xe3   : > { %591 = vrot.lane.b32.xlu1 %v451_v22, %s1370_s23 }
  0xe4   : > { %v490_v23 = vpop.f32.mrf.mxu1 }
  0xe5   : > { %v491_v24 = vadd.f32 %v1115_v17, %v490_v23 }
  0xe7   : > { %595 = vrot.lane.b32.xlu0 %v491_v24, %s1370_s23  ;;  %989 = vmatpush.xpose.msk.msra.mxu3 %vm526_vm2, %v491_v24 }
  0xe8   : > { %743 = vrot.lane.b32.xlu2 %v491_v24, %s1371_s29 }
  0xe9   : > { %v520_v57 = vpop.f32.mrf.mxu2 }
  0xea   : > { %v521_v59 = vadd.f32 %v1117_v58, %v520_v57 }
  0xeb   : > { %990 = vmatpush.xpose.msk.msra.mxu3 %vm526_vm2, %v488_v19  ;;  %670 = vrot.lane.b32.xlu1 %v491_v24, %s1369_s24 }
  0xee   : > { %991 = vmatmul.msk.f32.vlgmr.msra.gmra.mxu3 %vm526_vm2, %v451_v22 }
  0xef   : > { %593 = vrot.lane.b32.xlu0 %v488_v19, %s1370_s23 }
  0xf0   : > { %739 = vrot.lane.b32.xlu2 %v451_v22, %s1371_s29 }
  0xf1   : > { %v523_v60 = vpop.f32.mrf.mxu2 }
  0xf2   : > { %v524_v61 = vadd.f32 %v1117_v58, %v523_v60 }
  0xf3   : > { %666 = vrot.lane.b32.xlu1 %v451_v22, %s1369_s24 }
  0xf4   : > { %585 = vmatpush.msrb.mxu3 %v524_v61  ;;  %v1100_v62 = vpack.i.bf16 %v521_v59, %v524_v61 }
  0xf6   : > { %586 = vmatpush.msrb.mxu3 %v521_v59 }
  0xf7   : > { %741 = vrot.lane.b32.xlu0 %v488_v19, %s1371_s29 }
 0x139   : > { %v669_v29 = vpop.permute.xlu2 %668 }
 0x142   : > { %v744_v36 = vpop.permute.xlu2 %743 }
 0x14a   : > { %v740_v39 = vpop.permute.xlu2 %739 }
 0x155   : > { %v592_v25 = vpop.permute.xlu1 %591 }
 0x159   : > { %v596_v30 = vpop.permute.xlu0 %595 }
 0x15a   : > { %993 = vmatpush.xpose.msk.msrb.mxu0 %vm526_vm2, %v596_v30 }
 0x15d   : > { %v671_v33 = vpop.permute.xlu1 %670 }
 0x15e   : > { %997 = vmatpush.xpose.msk.msrb.mxu1 %vm526_vm2, %v671_v33 }
 0x161   : > { %v594_v35 = vpop.permute.xlu0 %593 }
 0x162   : > { %994 = vmatpush.xpose.msk.msrb.mxu0 %vm526_vm2, %v594_v35  ;;  %998 = vmatpush.xpose.msk.msrb.mxu1 %vm526_vm2, %v669_v29 }
 0x165   : > { %995 = vmatmul.msk.f32.vlgmr.msrb.gmra.mxu0 %vm526_vm2, %v592_v25  ;;  %v667_v37 = vpop.permute.xlu1 %666 }
 0x166   : > { %1001 = vmatpush.xpose.msk.msra.mxu0 %vm526_vm2, %v744_v36  ;;  %999 = vmatmul.msk.f32.vlgmr.msrb.gmra.mxu1 %vm526_vm2, %v667_v37 }
 0x169   : > { %v742_v38 = vpop.permute.xlu0 %741 }
 0x16a   : > { %1002 = vmatpush.xpose.msk.msra.mxu0 %vm526_vm2, %v742_v38 }
 0x16d   : > { %1003 = vmatmul.msk.f32.vlgmr.msra.gmra.mxu0 %vm526_vm2, %v740_v39 }
 0x171   : > { %v553_v40 = vpop.f32.mrf.mxu3 }
 0x172   : > { %v556_v41 = vmul.f32 0.25, %v553_v40 }
 0x174   : > { %v557_v42 = vsel %vm526_vm2, %v556_v41, -inf }
 0x175   : > { %558 = vmax.xlane.f32.xlu0 %v557_v42 }
 0x1e2   : > { %v620_v43 = vpop.f32.mrf.mxu0 }
 0x1e3   : > { %v623_v44 = vmul.f32 0.25, %v620_v43  ;;  %v695_v45 = vpop.f32.mrf.mxu1 }
 0x1e4   : > { %v698_v46 = vmul.f32 0.25, %v695_v45 }
 0x1e5   : > { %v624_v47 = vsel %vm526_vm2, %v623_v44, -inf }
 0x1e6   : > { %625 = vmax.xlane.f32.xlu1 %v624_v47  ;;  %v699_v48 = vsel %vm526_vm2, %v698_v46, -inf }
 0x1e7   : > { %700 = vmax.xlane.f32.xlu2 %v699_v48 }
 0x1e8   : > { %v559_v49 = vpop.xlane.xlu0 %558 }
 0x1e9   : > { %v560_v50 = vsub.f32 %v556_v41, %v559_v49 }
 0x1ea   : > { %v768_v51 = vpop.f32.mrf.mxu0 }
 0x1eb   : > { %v561_v52 = vmul.f32 1.442695, %v560_v50  ;;  %v771_v53 = vmul.f32 0.25, %v768_v51 }
 0x1ed   : > { %1118 = vpow2.f32 %v561_v52  ;;  %v772_v54 = vsel %vm526_vm2, %v771_v53, -inf }
 0x1ef   : > { %773 = vmax.xlane.f32.xlu2 %v772_v54 }
 0x1f3   : > { %v1119_v55 = vpop.eup %1118 }
 0x1f4   : > { %v563_v56 = vsel %vm526_vm2, %v1119_v55, 0.0 }
 0x1f5   : > { %564 = vadd.xlane.f32.xlu0 %v563_v56 }
 0x207   : > { %1101 = vrot.lane.b32.xlu2 %v1100_v62, %s1370_s23  ;;  %s1304_s23 = scalar_lea.hbm %s1696_s8, 16 }
 0x208   : > { %p1306_p9 = scmp.lt.s32.totalorder %s1304_s23, %s1300_s14 }
 0x20a   : > { %p1307_p8 = por %p1306_p9, %p1305_p7 }
 0x20c   : > { %p1308_p5 = pnand %p1307_p8, %p1303_p13 }
 0x259   : > { %v626_v63 = vpop.xlane.xlu1 %625 }
 0x25a   : > { %v627_v0 = vsub.f32 %v623_v44, %v626_v63  ;;  %v701_v1 = vpop.xlane.xlu2 %700 }
 0x25b   : > { %v702_v2 = vsub.f32 %v698_v46, %v701_v1 }
 0x25c   : > { %v628_v3 = vmul.f32 1.442695, %v627_v0 }
 0x25d   : > { %v703_v4 = vmul.f32 1.442695, %v702_v2 }
 0x25e   : > { %1120 = vpow2.f32 %v628_v3 }
 0x25f   : > { %1122 = vpow2.f32 %v703_v4 }
 0x262   : > { %v774_v5 = vpop.xlane.xlu2 %773 }
 0x263   : > { %v775_v6 = vsub.f32 %v771_v53, %v774_v5 }
 0x264   : > { %v1121_v7 = vpop.eup %1120 }
 0x265   : > { %v1123_v8 = vpop.eup %1122  ;;  %v776_v9 = vmul.f32 1.442695, %v775_v6  ;;  %v630_v10 = vsel %vm526_vm2, %v1121_v7, 0.0 }
 0x266   : > { %631 = vadd.xlane.f32.xlu1 %v630_v10  ;;  %v705_v11 = vsel %vm526_vm2, %v1123_v8, 0.0 }
 0x267   : > { %1124 = vpow2.f32 %v776_v9  ;;  %706 = vadd.xlane.f32.xlu0 %v705_v11 }
 0x268   : > { %v565_v12 = vpop.xlane.xlu0 %564 }
 0x269   : > { %1126 = vrcp.f32 %v565_v12 }
 0x26a   : > { %v1102_v17 = vpop.permute.xlu2 %1101 }
 0x26b   : > { %v1104_v18 = vunpack.i.h.bf16 %v1102_v17  ;;  %v1103_v19 = vunpack.i.l.bf16 %v1102_v17 }
 0x26d   : > { %v1125_v13 = vpop.eup %1124  ;;  %660 = vmatpush.msra.mxu3 %v1103_v19 }
 0x26e   : > { %v778_v14 = vsel %vm526_vm2, %v1125_v13, 0.0 }
 0x26f   : > { %v1127_v15 = vpop.eup %1126  ;;  %779 = vadd.xlane.f32.xlu1 %v778_v14  ;;  %661 = vmatpush.msra.mxu3 %v1104_v18 }
 0x270   : > { %v567_v16 = vmul.f32 %v1127_v15, %v1119_v55 }
 0x272   : > { %992 = vmatmul.msk.f32.vlgmr.msrb.gmra.mxu3 %vm526_vm2, %v567_v16 }
 0x27b   : > { %1106 = vrot.lane.b32.xlu0 %v1100_v62, %s1369_s24 }
 0x288   : > { %1111 = vrot.lane.b32.xlu1 %v1100_v62, %s1371_s29 }
 0x2d9   : > { %v632_v20 = vpop.xlane.xlu1 %631 }
 0x2da   : > { %1128 = vrcp.f32 %v632_v20  ;;  %v707_v23 = vpop.xlane.xlu0 %706 }
 0x2db   : > { %1130 = vrcp.f32 %v707_v23 }
 0x2e0   : > { %v1129_v21 = vpop.eup %1128 }
 0x2e1   : > { %v634_v22 = vmul.f32 %v1129_v21, %v1121_v7  ;;  %v1131_v25 = vpop.eup %1130 }
 0x2e2   : > { %v709_v28 = vmul.f32 %v1131_v25, %v1123_v8  ;;  %v780_v29 = vpop.xlane.xlu1 %779 }
 0x2e3   : > { %996 = vmatmul.msk.f32.vlgmr.msra.gmra.mxu3 %vm526_vm2, %v634_v22  ;;  %1132 = vrcp.f32 %v780_v29 }
 0x2e9   : > { %v1133_v31 = vpop.eup %1132 }
 0x2ea   : > { %v782_v34 = vmul.f32 %v1133_v31, %v1125_v13 }
 0x2ed   : > { %v1107_v24 = vpop.permute.xlu0 %1106 }
 0x2ee   : > { %v1108_v26 = vunpack.i.l.bf16 %v1107_v24  ;;  %v1109_v27 = vunpack.i.h.bf16 %v1107_v24 }
 0x2f0   : > { %733 = vmatpush.msrb.mxu2 %v1108_v26 }
 0x2f2   : > { %734 = vmatpush.msrb.mxu2 %v1109_v27 }
 0x2f3   : > { %1000 = vmatmul.msk.f32.vlgmr.msrb.gmra.mxu2 %vm526_vm2, %v709_v28 }
 0x2f5   : > { %v588_v35 = vpop.f32.mrf.mxu3 }
 0x2fa   : > { %v1112_v30 = vpop.permute.xlu1 %1111 }
 0x2fb   : > { %v1113_v32 = vunpack.i.l.bf16 %v1112_v30  ;;  %v1114_v33 = vunpack.i.h.bf16 %v1112_v30 }
 0x2fd   : > { %806 = vmatpush.msrb.mxu3 %v1113_v32 }
 0x2ff   : > { %807 = vmatpush.msrb.mxu3 %v1114_v33 }
 0x300   : > { %1004 = vmatmul.msk.f32.vlgmr.msrb.gmra.mxu3 %vm526_vm2, %v782_v34 }
 0x366   : > { %v663_v36 = vpop.f32.mrf.mxu3 }
 0x367   : > { %813 = vrot.lane.b32.xlu2 %v663_v36, %s1372_s4 }
 0x376   : > { %v736_v37 = vpop.f32.mrf.mxu2 }
 0x377   : > { %817 = vrot.lane.b32.xlu0 %v736_v37, %s1373_s10 }
 0x383   : > { %v809_v38 = vpop.f32.mrf.mxu3 }
 0x384   : > { %821 = vrot.lane.b32.xlu2 %v809_v38, %s1374_s21 }
 0x3c1   : > { %v814_v39 = vpop.permute.xlu2 %813 }
 0x3c2   : > { %v824_v40 = vsel %vm526_vm2, %v588_v35, %v814_v39 }
 0x3de   : > { %v822_v42 = vpop.permute.xlu2 %821 }
 0x3e9   : > { %v818_v41 = vpop.permute.xlu0 %817 }
 0x3ea   : > { %v826_v43 = vsel %vm825_vm3, %v824_v40, %v818_v41 }
 0x3eb   : > { %v827_v44 = vsel %vm463_vm0, %v826_v43, %v822_v42 }
 0x3ec   : > { %828 = vst.msk [vmem:[%s413_s25] sm:$0xff] %vm429_vm1, %v827_v44 }
 0x3ed   : > { %1311 = shalt.err (!%p1308_p5)
}
 0x3ee   : > { %1026 = dma.vmem_to_hbm [thread:$0]  (%p1509_p0), %s843_s19, 128, %s845_s18, %s830_s12  }
 0x3ef PF: > { %s856_s2 = sand.u32 1, %s1350_s27   ;;  %p1720_p10 = scmp.ge.s32.totalorder %s1362_s30, 2 }
 0x3f0   : > { %s857_s16 = scalar_lea.sflag [#allocation4], %s856_s2 }
 0x3f1   : > { %p1046_p11 = pnand %p1720_p10, %p1517_p6 }
 0x3f3   : > { %p1047_p12 = pneg %p1046_p11 }
 0x3f5   : > { %1345 = dma.done.wait (%p1047_p12), %s857_s16, 128  }
 0x3f6   : > { %1347 = vsyncadd (%p1047_p12), %s857_s16, 4294967168  ;;  %s1721_s30 = sld [smem:[#allocation18_spill]]  ;;  %s1724_s27 = smov %s1354_s28 }
 0x3f7   : > { %s1722_s4 = sld [smem:[#allocation17_spill]] }
 0x3f8   : > { %s1723_s29 = sld [smem:[#allocation19_spill]] }
 0x3fc   : > { %p25_p2 = scmp.ge.s32.totalorder %s1721_s30, 4  }
 0x3fd   : > { %s1725_s28 = smov %s1722_s4 }
 0x3fe   :  { %27 = sbr.rel (!%p25_p2) target bundleno = 12 (0xc), region = 122 }
 0x403   :  { %863 = vsyncpa [#allocation3], 1 }
 0x404   :  { %865 = vsyncpa [#allocation3 + $0x1], 1 }
 0x405   :  { %866 = vsyncpa [#allocation6], 1 }
 0x406   :  { %868 = vsyncpa [#allocation6 + $0x1], 1 }
 0x407   :  { %869 = vsyncpa [#allocation9], 1 }
 0x408   :  { %870 = vsyncpa [#allocation4], 1 }
 0x409   :  { %872 = vsyncpa [#allocation4 + $0x1], 1 }

</bundles_post_ra>
